<compile_context>
chip_gen: v5e
topology: v5e:2x2
jax: 0.10.0
libtpu: 0.0.40
codegen_flags: <defaults>
</compile_context>

<pallas_src>
import math

import jax
import jax.numpy as jnp
from jax import lax
from jax.experimental import pallas as pl
from jax.experimental.pallas import tpu as pltpu


# ----------------------------------------------------------------------------
# Wrapper-side constant builders (plain JAX, tiny, built once per call)
# ----------------------------------------------------------------------------
def _band_weight(w_hwio, W):
    """HWIO (3,3,Ci,Co) -> per-row-tap banded matrices (3, W*Ci, W*Co).

    With image planes laid out lane-dense as (rows, W*Ci), tap ky of the
    'same'-padded 3x3 conv is  shifted_plane(ky) @ band[ky] ; the kx taps and
    channel mixing are folded into the band.  Columns outside the image
    contribute zero automatically, so no explicit W padding is needed.
    """
    kh, kw, Ci, Co = w_hwio.shape
    w_in = jnp.arange(W)[:, None]
    w_out = jnp.arange(W)[None, :]
    sel = jnp.stack([(w_in == w_out + kx - 1) for kx in range(kw)], axis=0)
    sel = sel.astype(w_hwio.dtype)                       # (kx, w_in, w_out)
    band = jnp.einsum("axw,yaic->yxiwc", sel, w_hwio)    # (ky, w_in, Ci, w_out, Co)
    return band.reshape(kh, W * Ci, W * Co)


def _halo_masks(Nb, H, dtype):
    r = jnp.arange(Nb * H)
    up = (r % H != 0).astype(dtype)[:, None]        # zero where row h-1 doesn't exist
    dn = (r % H != H - 1).astype(dtype)[:, None]    # zero where row h+1 doesn't exist
    return up, dn


def _pool_row_selectors(Nb, H, dtype):
    """0/1 (P2, Nb*H) matrices picking the packed-block source row of the even /
    odd pooled rows (P2 = Nb*Ho // 2)."""
    Ho = H // 2
    P2 = (Nb * Ho) // 2
    m = jnp.arange(P2)
    rows = jnp.arange(Nb * H)[None, :]

    def pick(ms):
        src = (ms // Ho) * H + 2 * (ms % Ho)
        return (src[:, None] == rows).astype(dtype)

    return pick(2 * m), pick(2 * m + 1)


def _pool_col_packers(W, Cout, dtype):
    """0/1 (W*Cout, 2*Wo*Cout) matrices: colL scatters the even column groups
    into the left lane half, colR into the right half (zero elsewhere)."""
    WoC = (W // 2) * Cout
    p = jnp.arange(W * Cout)[:, None]
    q = jnp.arange(2 * WoC)[None, :]
    qm = q % WoC
    src = 2 * (qm // Cout) * Cout + (qm % Cout)
    hit = p == src
    return ((hit & (q < WoC)).astype(dtype),
            (hit & (q >= WoC)).astype(dtype))


def _choose_nb(N, H, target_rows=128):
    """Largest batch pack Nb (divisor of N) with Nb*H <= target_rows, preferring
    to keep the 'parallel' grid length >= 2 so both v7x TensorCores get work."""
    cap = max(1, target_rows // H)
    divs = [d for d in range(1, N + 1) if N % d == 0 and d <= cap]
    multi = [d for d in divs if N // d >= 2]
    return max(multi) if multi else max(divs)


# ----------------------------------------------------------------------------
# Fused Pallas kernel: conv3x3+ReLU -> conv3x3+ReLU -> (skip, maxpool2x2)
# ----------------------------------------------------------------------------
def _make_kernel(Cout):
    f32, bf16 = jnp.float32, jnp.bfloat16

    def kernel(x_ref, w1_ref, b1_ref, w2_ref, b2_ref, upm_ref, dnm_ref,
               selA_ref, selB_ref, colL_ref, colR_ref, skip_ref, pool_ref):
        upm = upm_ref[...]            # (M, 1) halo masks (hoisted constants)
        dnm = dnm_ref[...]

        def conv3x3_relu(y, w_ref, b_ref):
            # y: (M, W*Ci) f32, Nb images stacked along rows (M = Nb*H).
            M = y.shape[0]
            # +-1 row halo via XLU sublane rotation (positive shifts only),
            # zeroed at image boundaries by the 0/1 masks.
            up = pltpu.roll(y, 1, axis=0) * upm        # row r <- y[r-1]
            dn = pltpu.roll(y, M - 1, axis=0) * dnm    # row r <- y[r+1]
            # Three accumulating bf16 MXU matmuls (per ky tap), f32 accumulation.
            acc = jnp.dot(up.astype(bf16), w_ref[0], preferred_element_type=f32)
            acc = acc + jnp.dot(y.astype(bf16), w_ref[1], preferred_element_type=f32)
            acc = acc + jnp.dot(dn.astype(bf16), w_ref[2], preferred_element_type=f32)
            return jnp.maximum(acc + b_ref[...], 0.0)  # bias + ReLU in f32

        x = x_ref[0]                                   # (M, W*Cin_p) f32, lane-dense
        y1 = conv3x3_relu(x, w1_ref, b1_ref)           # (M, W*Cout)
        y2 = conv3x3_relu(y1, w2_ref, b2_ref)          # (M, W*Cout)

        skip_ref[0] = y2.astype(skip_ref.dtype)        # full-lane store

        # ---- fused 2x2 stride-2 max-pool epilogue ----
        M, WC = y2.shape
        rmax = jnp.maximum(y2, pltpu.roll(y2, M - 1, axis=0))          # rows (r, r+1)
        cmax = jnp.maximum(rmax, pltpu.roll(rmax, WC - Cout, axis=1))  # cols (w, w+1)
        # Exact 0/1 gathers emitting the lane-dense packed pooled layout:
        #   packed[k, :WoC] = pooled row 2k , packed[k, WoC:] = pooled row 2k+1
        a = jnp.dot(selA_ref[...], cmax, preferred_element_type=f32)
        b = jnp.dot(selB_ref[...], cmax, preferred_element_type=f32)
        packed = (jnp.dot(a, colL_ref[...], preferred_element_type=f32)
                  + jnp.dot(b, colR_ref[...], preferred_element_type=f32))
        pool_ref[0] = packed.astype(pool_ref.dtype)    # full-lane store

    return kernel


# ----------------------------------------------------------------------------
# Wrappers
# ----------------------------------------------------------------------------
def encoder_block_forward_nhwc(x_nhwc, w1, b1, w2, b2, *, target_rows=128):
    """Fused conv-relu-conv-relu-pool.  x: (N,H,W,Cin) NHWC, weights HWIO.
    Returns (skip, pooled) in NHWC."""
    N, H, W, Cin = x_nhwc.shape
    Cout = w1.shape[-1]
    assert H % 2 == 0 and W % 2 == 0, "maxpool 2x2/2 needs even H and W"
    Ho, Wo = H // 2, W // 2

    Nb = _choose_nb(N, H, target_rows)                 # batch packing factor
    G = N // Nb                                        # grid length (>=2 when possible)
    M = Nb * H                                         # matmul M dimension
    assert (Nb * Ho) % 2 == 0, "lane-dense packed pooled layout needs Nb*Ho even"
    P2 = (Nb * Ho) // 2
    WoC = Wo * Cout

    # Zero-pad Cin so the input plane / conv1 K dim is a multiple of 128 lanes.
    step = 128 // math.gcd(W, 128)
    Cin_p = -(-Cin // step) * step
    if Cin_p > Cin and (Cin_p - Cin) > max(Cin, 8):
        Cin_p = Cin                                    # don't blow up K for awkward W
    if Cin_p > Cin:
        pad = Cin_p - Cin
        x_nhwc = jnp.pad(x_nhwc, ((0, 0), (0, 0), (0, 0), (0, pad)))
        w1 = jnp.pad(w1, ((0, 0), (0, 0), (0, pad), (0, 0)))

    out_dtype = x_nhwc.dtype
    x_pk = x_nhwc.reshape(G, M, W * Cin_p)             # free row-major reshape

    # Hoisted constants (fetched exactly once via constant index_maps).
    w1b = _band_weight(w1, W).astype(jnp.bfloat16)     # (3, W*Cin_p, W*Cout)
    w2b = _band_weight(w2, W).astype(jnp.bfloat16)     # (3, W*Cout,  W*Cout)
    b1t = jnp.tile(b1.reshape(1, Cout), (1, W)).astype(jnp.float32)
    b2t = jnp.tile(b2.reshape(1, Cout), (1, W)).astype(jnp.float32)
    upm, dnm = _halo_masks(Nb, H, jnp.float32)
    selA, selB = _pool_row_selectors(Nb, H, jnp.float32)
    colL, colR = _pool_col_packers(W, Cout, jnp.float32)

    def const_spec(arr):
        return pl.BlockSpec(arr.shape, lambda g, _nd=arr.ndim: (0,) * _nd)

    skip_flat, pool_flat = pl.pallas_call(
        _make_kernel(Cout),
        out_shape=(jax.ShapeDtypeStruct((G, M, W * Cout), out_dtype),
                   jax.ShapeDtypeStruct((G, P2, 2 * WoC), out_dtype)),
        grid=(G,),
        in_specs=[
            pl.BlockSpec((1, M, W * Cin_p), lambda g: (g, 0, 0)),
            const_spec(w1b), const_spec(b1t),
            const_spec(w2b), const_spec(b2t),
            const_spec(upm), const_spec(dnm),
            const_spec(selA), const_spec(selB),
            const_spec(colL), const_spec(colR),
        ],
        out_specs=(
            pl.BlockSpec((1, M, W * Cout), lambda g: (g, 0, 0)),
            pl.BlockSpec((1, P2, 2 * WoC), lambda g: (g, 0, 0)),
        ),
        compiler_params=pltpu.CompilerParams(
            dimension_semantics=("parallel",)),
    )(x_pk, w1b, b1t, w2b, b2t, upm, dnm, selA, selB, colL, colR)

    skip = skip_flat.reshape(N, H, W, Cout)            # free reshapes (row-major)
    pooled = pool_flat.reshape(N, Ho, Wo, Cout)
    return skip, pooled


@jax.jit
def encoder_block_forward(x_nchw, w1, b1, w2, b2):
    """PyTorch-layout entry point (NCHW in / NCHW out) matching EncoderBlock.forward."""
    x = jnp.transpose(x_nchw, (0, 2, 3, 1))            # layout glue for the NCHW API only
    skip, pooled = encoder_block_forward_nhwc(x, w1, b1, w2, b2)
    return (jnp.transpose(skip, (0, 3, 1, 2)),
            jnp.transpose(pooled, (0, 3, 1, 2)))


# ----------------------------------------------------------------------------
# Pure-JAX reference for correctness check
# ----------------------------------------------------------------------------
def ref_forward(x_nchw, w1, b1, w2, b2):
    x = jnp.transpose(x_nchw, (0, 2, 3, 1))

    def conv(x, w, b):
        y = lax.conv_general_dilated(x, w, window_strides=(1, 1), padding="SAME",
                                     dimension_numbers=("NHWC", "HWIO", "NHWC"))
        return jnp.maximum(y + b.reshape(1, 1, 1, -1), 0.0)

    y = conv(conv(x, w1, b1), w2, b2)
    N, H, W, C = y.shape
    pooled = y.reshape(N, H // 2, 2, W // 2, 2, C).max(axis=(2, 4))
    return jnp.transpose(y, (0, 3, 1, 2)), jnp.transpose(pooled, (0, 3, 1, 2))


# ----------------------------------------------------------------------------
# Main
# ----------------------------------------------------------------------------
if __name__ == "__main__":
    # batch=4 so the kernel exercises both batch packing (Nb=2, M=32) and a
    # length-2 "parallel" grid.
    N, Cin, Cout, H, W = 4, 4, 8, 16, 16

    key = jax.random.PRNGKey(0)
    kx_, kw1, kb1, kw2, kb2 = jax.random.split(key, 5)

    x = jax.random.normal(kx_, (N, Cin, H, W), dtype=jnp.float32)   # NCHW input

    # Deterministic parameter init (HWIO), PyTorch-like uniform bounds.
    bound1 = 1.0 / (Cin * 9) ** 0.5
    w1 = jax.random.uniform(kw1, (3, 3, Cin, Cout), jnp.float32, -bound1, bound1)
    b1 = jax.random.uniform(kb1, (Cout,), jnp.float32, -bound1, bound1)
    bound2 = 1.0 / (Cout * 9) ** 0.5
    w2 = jax.random.uniform(kw2, (3, 3, Cout, Cout), jnp.float32, -bound2, bound2)
    b2 = jax.random.uniform(kb2, (Cout,), jnp.float32, -bound2, bound2)

    skip, pooled = encoder_block_forward(x, w1, b1, w2, b2)
    jax.block_until_ready((skip, pooled))

    skip_ref, pooled_ref = ref_forward(x, w1, b1, w2, b2)
    assert skip.shape == (N, Cout, H, W)
    assert pooled.shape == (N, Cout, H // 2, W // 2)
    # bf16 MXU operands -> relaxed tolerance vs the pure-f32 reference.
    assert jnp.max(jnp.abs(skip - skip_ref)) < 3e-2, "skip mismatch vs reference"
    assert jnp.max(jnp.abs(pooled - pooled_ref)) < 3e-2, "pooled mismatch vs reference"
    # Internal consistency: pooled must (near-)exactly be the 2x2/2 max pool of skip.
    skip_nhwc = jnp.transpose(skip, (0, 2, 3, 1))
    pool_of_skip = skip_nhwc.reshape(N, H // 2, 2, W // 2, 2, Cout).max(axis=(2, 4))
    pool_of_skip = jnp.transpose(pool_of_skip, (0, 3, 1, 2))
    assert jnp.max(jnp.abs(pooled - pool_of_skip)) < 1e-2, "pool/skip inconsistency"

    print("KERNEL_OK")
</pallas_src>

<mosaic_0001>
module attributes {stable_mosaic.version = 11 : i64} {
  func.func @kernel(%arg0: i32, %arg1: memref<1x32x128xf32, #tpu.memory_space<vmem>>, %arg2: memref<3x128x128xbf16, #tpu.memory_space<vmem>>, %arg3: memref<1x128xf32, #tpu.memory_space<vmem>>, %arg4: memref<3x128x128xbf16, #tpu.memory_space<vmem>>, %arg5: memref<1x128xf32, #tpu.memory_space<vmem>>, %arg6: memref<32x1xf32, #tpu.memory_space<vmem>>, %arg7: memref<32x1xf32, #tpu.memory_space<vmem>>, %arg8: memref<8x32xf32, #tpu.memory_space<vmem>>, %arg9: memref<8x32xf32, #tpu.memory_space<vmem>>, %arg10: memref<128x128xf32, #tpu.memory_space<vmem>>, %arg11: memref<128x128xf32, #tpu.memory_space<vmem>>, %arg12: memref<1x32x128xf32, #tpu.memory_space<vmem>>, %arg13: memref<1x8x128xf32, #tpu.memory_space<vmem>>) attributes {dimension_semantics = [#tpu.dimension_semantics<parallel>], iteration_bounds = array<i64: 2>, scalar_prefetch = 0 : i64, scratch_operands = 0 : i64, tpu.core_type = #tpu.core_type<tc>, window_params = [{transform_indices = @transform_0, window_bounds = array<i64: 1, 32, 128>}, {pipeline_mode = #tpu.pipeline_mode<synchronous>, transform_indices = @transform_1, window_bounds = array<i64: 3, 128, 128>}, {pipeline_mode = #tpu.pipeline_mode<synchronous>, transform_indices = @transform_2, window_bounds = array<i64: 1, 128>}, {pipeline_mode = #tpu.pipeline_mode<synchronous>, transform_indices = @transform_3, window_bounds = array<i64: 3, 128, 128>}, {pipeline_mode = #tpu.pipeline_mode<synchronous>, transform_indices = @transform_4, window_bounds = array<i64: 1, 128>}, {pipeline_mode = #tpu.pipeline_mode<synchronous>, transform_indices = @transform_5, window_bounds = array<i64: 32, 1>}, {pipeline_mode = #tpu.pipeline_mode<synchronous>, transform_indices = @transform_6, window_bounds = array<i64: 32, 1>}, {pipeline_mode = #tpu.pipeline_mode<synchronous>, transform_indices = @transform_7, window_bounds = array<i64: 8, 32>}, {pipeline_mode = #tpu.pipeline_mode<synchronous>, transform_indices = @transform_8, window_bounds = array<i64: 8, 32>}, {pipeline_mode = #tpu.pipeline_mode<synchronous>, transform_indices = @transform_9, window_bounds = array<i64: 128, 128>}, {pipeline_mode = #tpu.pipeline_mode<synchronous>, transform_indices = @transform_10, window_bounds = array<i64: 128, 128>}, {transform_indices = @transform_11, window_bounds = array<i64: 1, 32, 128>}, {transform_indices = @transform_12, window_bounds = array<i64: 1, 8, 128>}]} {
    %c0 = arith.constant 0 : index
    %c0_0 = arith.constant 0 : index
    %0 = vector.load %arg6[%c0, %c0_0] : memref<32x1xf32, #tpu.memory_space<vmem>>, vector<32x1xf32>
    %c0_1 = arith.constant 0 : index
    %c0_2 = arith.constant 0 : index
    %1 = vector.load %arg7[%c0_1, %c0_2] : memref<32x1xf32, #tpu.memory_space<vmem>>, vector<32x1xf32>
    %c0_3 = arith.constant 0 : index
    %c0_4 = arith.constant 0 : index
    %c0_5 = arith.constant 0 : index
    %2 = vector.load %arg1[%c0_3, %c0_4, %c0_5] : memref<1x32x128xf32, #tpu.memory_space<vmem>>, vector<1x32x128xf32>
    %3 = vector.shape_cast %2 : vector<1x32x128xf32> to vector<32x128xf32>
    %c1_i32 = arith.constant 1 : i32
    %4 = tpu.dynamic_rotate %3 by %c1_i32 dim 0 : vector<32x128xf32>, i32 -> vector<32x128xf32>
    %5 = vector.broadcast %0 : vector<32x1xf32> to vector<32x128xf32>
    %6 = arith.mulf %4, %5 : vector<32x128xf32>
    %c31_i32 = arith.constant 31 : i32
    %7 = tpu.dynamic_rotate %3 by %c31_i32 dim 0 : vector<32x128xf32>, i32 -> vector<32x128xf32>
    %8 = vector.broadcast %1 : vector<32x1xf32> to vector<32x128xf32>
    %9 = arith.mulf %7, %8 : vector<32x128xf32>
    %10 = arith.truncf %6 : vector<32x128xf32> to vector<32x128xbf16>
    %c0_6 = arith.constant 0 : index
    %c0_7 = arith.constant 0 : index
    %c0_8 = arith.constant 0 : index
    %11 = vector.load %arg2[%c0_6, %c0_7, %c0_8] : memref<3x128x128xbf16, #tpu.memory_space<vmem>>, vector<1x128x128xbf16>
    %12 = vector.shape_cast %11 : vector<1x128x128xbf16> to vector<128x128xbf16>
    %cst = arith.constant dense<0.000000e+00> : vector<32x128xf32>
    %13 = tpu.matmul %10, %12, %cst {dimension_numbers = #tpu.dot_dimension_numbers<[1], [0], [0], [1], [0, 0, 1, 1], [], []>} : vector<32x128xbf16>, vector<128x128xbf16>, vector<32x128xf32> -> vector<32x128xf32>
    %14 = arith.truncf %3 : vector<32x128xf32> to vector<32x128xbf16>
    %c1 = arith.constant 1 : index
    %c0_9 = arith.constant 0 : index
    %c0_10 = arith.constant 0 : index
    %15 = vector.load %arg2[%c1, %c0_9, %c0_10] : memref<3x128x128xbf16, #tpu.memory_space<vmem>>, vector<1x128x128xbf16>
    %16 = vector.shape_cast %15 : vector<1x128x128xbf16> to vector<128x128xbf16>
    %cst_11 = arith.constant dense<0.000000e+00> : vector<32x128xf32>
    %17 = tpu.matmul %14, %16, %cst_11 {dimension_numbers = #tpu.dot_dimension_numbers<[1], [0], [0], [1], [0, 0, 1, 1], [], []>} : vector<32x128xbf16>, vector<128x128xbf16>, vector<32x128xf32> -> vector<32x128xf32>
    %18 = arith.addf %13, %17 : vector<32x128xf32>
    %19 = arith.truncf %9 : vector<32x128xf32> to vector<32x128xbf16>
    %c2 = arith.constant 2 : index
    %c0_12 = arith.constant 0 : index
    %c0_13 = arith.constant 0 : index
    %20 = vector.load %arg2[%c2, %c0_12, %c0_13] : memref<3x128x128xbf16, #tpu.memory_space<vmem>>, vector<1x128x128xbf16>
    %21 = vector.shape_cast %20 : vector<1x128x128xbf16> to vector<128x128xbf16>
    %cst_14 = arith.constant dense<0.000000e+00> : vector<32x128xf32>
    %22 = tpu.matmul %19, %21, %cst_14 {dimension_numbers = #tpu.dot_dimension_numbers<[1], [0], [0], [1], [0, 0, 1, 1], [], []>} : vector<32x128xbf16>, vector<128x128xbf16>, vector<32x128xf32> -> vector<32x128xf32>
    %23 = arith.addf %18, %22 : vector<32x128xf32>
    %c0_15 = arith.constant 0 : index
    %c0_16 = arith.constant 0 : index
    %24 = vector.load %arg3[%c0_15, %c0_16] : memref<1x128xf32, #tpu.memory_space<vmem>>, vector<1x128xf32>
    %25 = vector.broadcast %24 : vector<1x128xf32> to vector<32x128xf32>
    %26 = arith.addf %23, %25 : vector<32x128xf32>
    %cst_17 = arith.constant 0.000000e+00 : f32
    %27 = vector.broadcast %cst_17 : f32 to vector<32x128xf32>
    %28 = arith.maximumf %26, %27 : vector<32x128xf32>
    %c1_i32_18 = arith.constant 1 : i32
    %29 = tpu.dynamic_rotate %28 by %c1_i32_18 dim 0 : vector<32x128xf32>, i32 -> vector<32x128xf32>
    %30 = vector.broadcast %0 : vector<32x1xf32> to vector<32x128xf32>
    %31 = arith.mulf %29, %30 : vector<32x128xf32>
    %c31_i32_19 = arith.constant 31 : i32
    %32 = tpu.dynamic_rotate %28 by %c31_i32_19 dim 0 : vector<32x128xf32>, i32 -> vector<32x128xf32>
    %33 = vector.broadcast %1 : vector<32x1xf32> to vector<32x128xf32>
    %34 = arith.mulf %32, %33 : vector<32x128xf32>
    %35 = arith.truncf %31 : vector<32x128xf32> to vector<32x128xbf16>
    %c0_20 = arith.constant 0 : index
    %c0_21 = arith.constant 0 : index
    %c0_22 = arith.constant 0 : index
    %36 = vector.load %arg4[%c0_20, %c0_21, %c0_22] : memref<3x128x128xbf16, #tpu.memory_space<vmem>>, vector<1x128x128xbf16>
    %37 = vector.shape_cast %36 : vector<1x128x128xbf16> to vector<128x128xbf16>
    %cst_23 = arith.constant dense<0.000000e+00> : vector<32x128xf32>
    %38 = tpu.matmul %35, %37, %cst_23 {dimension_numbers = #tpu.dot_dimension_numbers<[1], [0], [0], [1], [0, 0, 1, 1], [], []>} : vector<32x128xbf16>, vector<128x128xbf16>, vector<32x128xf32> -> vector<32x128xf32>
    %39 = arith.truncf %28 : vector<32x128xf32> to vector<32x128xbf16>
    %c1_24 = arith.constant 1 : index
    %c0_25 = arith.constant 0 : index
    %c0_26 = arith.constant 0 : index
    %40 = vector.load %arg4[%c1_24, %c0_25, %c0_26] : memref<3x128x128xbf16, #tpu.memory_space<vmem>>, vector<1x128x128xbf16>
    %41 = vector.shape_cast %40 : vector<1x128x128xbf16> to vector<128x128xbf16>
    %cst_27 = arith.constant dense<0.000000e+00> : vector<32x128xf32>
    %42 = tpu.matmul %39, %41, %cst_27 {dimension_numbers = #tpu.dot_dimension_numbers<[1], [0], [0], [1], [0, 0, 1, 1], [], []>} : vector<32x128xbf16>, vector<128x128xbf16>, vector<32x128xf32> -> vector<32x128xf32>
    %43 = arith.addf %38, %42 : vector<32x128xf32>
    %44 = arith.truncf %34 : vector<32x128xf32> to vector<32x128xbf16>
    %c2_28 = arith.constant 2 : index
    %c0_29 = arith.constant 0 : index
    %c0_30 = arith.constant 0 : index
    %45 = vector.load %arg4[%c2_28, %c0_29, %c0_30] : memref<3x128x128xbf16, #tpu.memory_space<vmem>>, vector<1x128x128xbf16>
    %46 = vector.shape_cast %45 : vector<1x128x128xbf16> to vector<128x128xbf16>
    %cst_31 = arith.constant dense<0.000000e+00> : vector<32x128xf32>
    %47 = tpu.matmul %44, %46, %cst_31 {dimension_numbers = #tpu.dot_dimension_numbers<[1], [0], [0], [1], [0, 0, 1, 1], [], []>} : vector<32x128xbf16>, vector<128x128xbf16>, vector<32x128xf32> -> vector<32x128xf32>
    %48 = arith.addf %43, %47 : vector<32x128xf32>
    %c0_32 = arith.constant 0 : index
    %c0_33 = arith.constant 0 : index
    %49 = vector.load %arg5[%c0_32, %c0_33] : memref<1x128xf32, #tpu.memory_space<vmem>>, vector<1x128xf32>
    %50 = vector.broadcast %49 : vector<1x128xf32> to vector<32x128xf32>
    %51 = arith.addf %48, %50 : vector<32x128xf32>
    %cst_34 = arith.constant 0.000000e+00 : f32
    %52 = vector.broadcast %cst_34 : f32 to vector<32x128xf32>
    %53 = arith.maximumf %51, %52 : vector<32x128xf32>
    %c0_35 = arith.constant 0 : index
    %c0_36 = arith.constant 0 : index
    %c0_37 = arith.constant 0 : index
    %54 = vector.load %arg12[%c0_35, %c0_36, %c0_37] : memref<1x32x128xf32, #tpu.memory_space<vmem>>, vector<1x32x128xf32>
    %55 = vector.shape_cast %54 : vector<1x32x128xf32> to vector<32x128xf32>
    %56 = vector.shape_cast %53 : vector<32x128xf32> to vector<1x32x128xf32>
    tpu.vector_store %arg12[%c0_35, %c0_36, %c0_37], %56 {strides = array<i32>} : memref<1x32x128xf32, #tpu.memory_space<vmem>>, vector<1x32x128xf32>,
    %c31_i32_38 = arith.constant 31 : i32
    %57 = tpu.dynamic_rotate %53 by %c31_i32_38 dim 0 : vector<32x128xf32>, i32 -> vector<32x128xf32>
    %58 = arith.maximumf %53, %57 : vector<32x128xf32>
    %c120_i32 = arith.constant 120 : i32
    %59 = tpu.dynamic_rotate %58 by %c120_i32 dim 1 : vector<32x128xf32>, i32 -> vector<32x128xf32>
    %60 = arith.maximumf %58, %59 : vector<32x128xf32>
    %c0_39 = arith.constant 0 : index
    %c0_40 = arith.constant 0 : index
    %61 = vector.load %arg8[%c0_39, %c0_40] : memref<8x32xf32, #tpu.memory_space<vmem>>, vector<8x32xf32>
    %cst_41 = arith.constant dense<0.000000e+00> : vector<8x128xf32>
    %62 = tpu.matmul %61, %60, %cst_41 {dimension_numbers = #tpu.dot_dimension_numbers<[1], [0], [0], [1], [0, 0, 1, 1], [], []>} : vector<8x32xf32>, vector<32x128xf32>, vector<8x128xf32> -> vector<8x128xf32>
    %c0_42 = arith.constant 0 : index
    %c0_43 = arith.constant 0 : index
    %63 = vector.load %arg9[%c0_42, %c0_43] : memref<8x32xf32, #tpu.memory_space<vmem>>, vector<8x32xf32>
    %cst_44 = arith.constant dense<0.000000e+00> : vector<8x128xf32>
    %64 = tpu.matmul %63, %60, %cst_44 {dimension_numbers = #tpu.dot_dimension_numbers<[1], [0], [0], [1], [0, 0, 1, 1], [], []>} : vector<8x32xf32>, vector<32x128xf32>, vector<8x128xf32> -> vector<8x128xf32>
    %c0_45 = arith.constant 0 : index
    %c0_46 = arith.constant 0 : index
    %65 = vector.load %arg10[%c0_45, %c0_46] : memref<128x128xf32, #tpu.memory_space<vmem>>, vector<128x128xf32>
    %cst_47 = arith.constant dense<0.000000e+00> : vector<8x128xf32>
    %66 = tpu.matmul %62, %65, %cst_47 {dimension_numbers = #tpu.dot_dimension_numbers<[1], [0], [0], [1], [0, 0, 1, 1], [], []>} : vector<8x128xf32>, vector<128x128xf32>, vector<8x128xf32> -> vector<8x128xf32>
    %c0_48 = arith.constant 0 : index
    %c0_49 = arith.constant 0 : index
    %67 = vector.load %arg11[%c0_48, %c0_49] : memref<128x128xf32, #tpu.memory_space<vmem>>, vector<128x128xf32>
    %cst_50 = arith.constant dense<0.000000e+00> : vector<8x128xf32>
    %68 = tpu.matmul %64, %67, %cst_50 {dimension_numbers = #tpu.dot_dimension_numbers<[1], [0], [0], [1], [0, 0, 1, 1], [], []>} : vector<8x128xf32>, vector<128x128xf32>, vector<8x128xf32> -> vector<8x128xf32>
    %69 = arith.addf %66, %68 : vector<8x128xf32>
    %c0_51 = arith.constant 0 : index
    %c0_52 = arith.constant 0 : index
    %c0_53 = arith.constant 0 : index
    %70 = vector.load %arg13[%c0_51, %c0_52, %c0_53] : memref<1x8x128xf32, #tpu.memory_space<vmem>>, vector<1x8x128xf32>
    %71 = vector.shape_cast %70 : vector<1x8x128xf32> to vector<8x128xf32>
    %72 = vector.shape_cast %69 : vector<8x128xf32> to vector<1x8x128xf32>
    tpu.vector_store %arg13[%c0_51, %c0_52, %c0_53], %72 {strides = array<i32>} : memref<1x8x128xf32, #tpu.memory_space<vmem>>, vector<1x8x128xf32>,
    return
  }
  func.func @transform_0(%arg0: i32) -> (i32, i32, i32) {
    %c0_i32 = arith.constant 0 : i32
    %c0_i32_0 = arith.constant 0 : i32
    %c0_i32_1 = arith.constant 0 : i32
    return %arg0, %c0_i32, %c0_i32_0 : i32, i32, i32
  }
  func.func @transform_1(%arg0: i32) -> (i32, i32, i32) {
    %c0_i32 = arith.constant 0 : i32
    %c0_i32_0 = arith.constant 0 : i32
    %c0_i32_1 = arith.constant 0 : i32
    %c0_i32_2 = arith.constant 0 : i32
    return %c0_i32, %c0_i32_0, %c0_i32_1 : i32, i32, i32
  }
  func.func @transform_2(%arg0: i32) -> (i32, i32) {
    %c0_i32 = arith.constant 0 : i32
    %c0_i32_0 = arith.constant 0 : i32
    %c0_i32_1 = arith.constant 0 : i32
    return %c0_i32, %c0_i32_0 : i32, i32
  }
  func.func @transform_3(%arg0: i32) -> (i32, i32, i32) {
    %c0_i32 = arith.constant 0 : i32
    %c0_i32_0 = arith.constant 0 : i32
    %c0_i32_1 = arith.constant 0 : i32
    %c0_i32_2 = arith.constant 0 : i32
    return %c0_i32, %c0_i32_0, %c0_i32_1 : i32, i32, i32
  }
  func.func @transform_4(%arg0: i32) -> (i32, i32) {
    %c0_i32 = arith.constant 0 : i32
    %c0_i32_0 = arith.constant 0 : i32
    %c0_i32_1 = arith.constant 0 : i32
    return %c0_i32, %c0_i32_0 : i32, i32
  }
  func.func @transform_5(%arg0: i32) -> (i32, i32) {
    %c0_i32 = arith.constant 0 : i32
    %c0_i32_0 = arith.constant 0 : i32
    %c0_i32_1 = arith.constant 0 : i32
    return %c0_i32, %c0_i32_0 : i32, i32
  }
  func.func @transform_6(%arg0: i32) -> (i32, i32) {
    %c0_i32 = arith.constant 0 : i32
    %c0_i32_0 = arith.constant 0 : i32
    %c0_i32_1 = arith.constant 0 : i32
    return %c0_i32, %c0_i32_0 : i32, i32
  }
  func.func @transform_7(%arg0: i32) -> (i32, i32) {
    %c0_i32 = arith.constant 0 : i32
    %c0_i32_0 = arith.constant 0 : i32
    %c0_i32_1 = arith.constant 0 : i32
    return %c0_i32, %c0_i32_0 : i32, i32
  }
  func.func @transform_8(%arg0: i32) -> (i32, i32) {
    %c0_i32 = arith.constant 0 : i32
    %c0_i32_0 = arith.constant 0 : i32
    %c0_i32_1 = arith.constant 0 : i32
    return %c0_i32, %c0_i32_0 : i32, i32
  }
  func.func @transform_9(%arg0: i32) -> (i32, i32) {
    %c0_i32 = arith.constant 0 : i32
    %c0_i32_0 = arith.constant 0 : i32
    %c0_i32_1 = arith.constant 0 : i32
    return %c0_i32, %c0_i32_0 : i32, i32
  }
  func.func @transform_10(%arg0: i32) -> (i32, i32) {
    %c0_i32 = arith.constant 0 : i32
    %c0_i32_0 = arith.constant 0 : i32
    %c0_i32_1 = arith.constant 0 : i32
    return %c0_i32, %c0_i32_0 : i32, i32
  }
  func.func @transform_11(%arg0: i32) -> (i32, i32, i32) {
    %c0_i32 = arith.constant 0 : i32
    %c0_i32_0 = arith.constant 0 : i32
    %c0_i32_1 = arith.constant 0 : i32
    return %arg0, %c0_i32, %c0_i32_0 : i32, i32, i32
  }
  func.func @transform_12(%arg0: i32) -> (i32, i32, i32) {
    %c0_i32 = arith.constant 0 : i32
    %c0_i32_0 = arith.constant 0 : i32
    %c0_i32_1 = arith.constant 0 : i32
    return %arg0, %c0_i32, %c0_i32_0 : i32, i32, i32
  }
}

</mosaic_0001>

<bundles_post_ra>
// kernel: encoder_block_forward.1
= control target key start
LH: loop header
LB: loop body
LE: loop exit
PB: predicated region body
PF: predicated region fallthrough
CT: control target
= control target key end

     0   :  { %s1731_s21 = smov 0   ;;  %s2129_s0 = inlined_call_operand.vmem [shape: f32[2,32,128], index: 0, kind: input, shape index: {}]   ;;  %s2130_s1 = inlined_call_operand.vmem [shape: bf16[3,128,128], index: 1, kind: input, shape index: {}]   ;;  %s2131_s2 = inlined_call_operand.vmem [shape: f32[1,128], index: 2, kind: input, shape index: {}]   ;;  %s2132_s3 = inlined_call_operand.vmem [shape: bf16[3,128,128], index: 3, kind: input, shape index: {}]   ;;  %s2133_s4 = inlined_call_operand.vmem [shape: f32[1,128], index: 4, kind: input, shape index: {}]   ;;  %s2134_s5 = inlined_call_operand.vmem [shape: f32[32,1], index: 5, kind: input, shape index: {}]   ;;  %s2135_s6 = inlined_call_operand.vmem [shape: f32[32,1], index: 6, kind: input, shape index: {}]   ;;  %s2136_s7 = inlined_call_operand.vmem [shape: f32[8,32], index: 7, kind: input, shape index: {}]   ;;  %s2137_s8 = inlined_call_operand.vmem [shape: f32[8,32], index: 8, kind: input, shape index: {}]   ;;  %s2138_s9 = inlined_call_operand.vmem [shape: f32[128,128], index: 9, kind: input, shape index: {}]   ;;  %s2139_s10 = inlined_call_operand.vmem [shape: f32[128,128], index: 10, kind: input, shape index: {}]   ;;  %s2140_s11 = inlined_call_operand.vmem [shape: f32[2,32,128], index: 11, kind: output, shape index: {0}]   ;;  %s2141_s12 = inlined_call_operand.vmem [shape: f32[2,8,128], index: 12, kind: output, shape index: {1}]  }
   0x1 LB: > { %s1311_s22 = sadd.s32 4294967295, %s1662_s21   ;;  %p1315_p0 = scmp.ge.s32.totalorder %s1662_s21, 1  ;;  %s1662_s21 = sphi %s1731_s21, %s23_s21  }
   0x2   : > { %p365_p1 = scmp.lt.s32.totalorder %s1662_s21, 3 }
   0x4   : > { %p366_p2 = pnand %p1315_p0, %p365_p1 }
   0x5   : > { %p411_p3 = scmp.lt.s32.totalorder (!%p366_p2), %s1311_s22, 1 }
   0x6   : > { %369 = sbr.rel (%p366_p2) target bundleno = 849 (0x351), region = 64 }
   0xb   : > { %v429_v0 = vld [vmem:[%s2135_s6] sm:$0xff]  ;;  %v1664_v2 = vmov 0   ;;  %v431_v3 = vld [vmem:[%s2135_s6 + $0x10] sm:$0xff]  ;;  %v1598_v4 = vld [vmem:[%s2130_s1 + $0x78] sm:$0xff]  ;;  %s2143_s22 = smov (!%p411_p3, %s1311_s22), 1  ;;  %v441_v39 = vlaneseq  ;;  %vm1104_vm2 = vcmask 261120  }
   0xc   : > { %v425_v1 = vld [vmem:[%s2134_s5] sm:$0xff]  ;;  %1642 = vset.pattern.permute.xlu1 %v1664_v2  ;;  %1641 = vset.pattern.permute.xlu0 %v1664_v2  ;;  %v1590_v5 = vld [vmem:[%s2130_s1 + $0x38] sm:$0xff]  ;;  %v1597_v7 = vld [vmem:[%s2130_s1 + $0x70] sm:$0xff]  ;;  %s1581_s23 = sshll.u32 %s2143_s22, 5  ;;  %s1320_s27 = sshll.u32 %s2143_s22, 3 }
   0xd   : > { %483 = vperm.xlu0 %1641, %v429_v0   ;;  %450 = vperm.xlu1 %1642, %v425_v1   ;;  %v1606_v6 = vld [vmem:[%s2130_s1 + $0xb8] sm:$0xff]  ;;  %v1589_v8 = vld [vmem:[%s2130_s1 + $0x30] sm:$0xff]  ;;  %v430_v10 = vld [vmem:[%s2135_s6 + $0x8] sm:$0xff]  ;;  %s415_s18 = scalar_lea.vmem %s2129_s0, %s1581_s23  ;;  %v1850_v41 = vshrl.u32 %v441_v39, 7  ;;  %s1998_s19 = scalar_lea.vmem %s2140_s11, %s1581_s23 }
   0xe   : > { %1643 = vset.pattern.permute.xlu2 %v1664_v2  ;;  %590 = vmatpush.bf16.msra.mxu0 %v1598_v4  ;;  %v1605_v9 = vld [vmem:[%s2130_s1 + $0xb0] sm:$0xff]  ;;  %v426_v11 = vld [vmem:[%s2134_s5 + $0x8] sm:$0xff]  ;;  %v432_v13 = vld [vmem:[%s2135_s6 + $0x18] sm:$0xff]  ;;  %s1665_s23 = smov 120   ;;  %s424_s30 = scalar_lea.vmem %s2141_s12, %s1320_s27 }
   0xf   : > { %493 = vperm.xlu2 %1643, %v431_v3   ;;  %657 = vmatpush.bf16.msra.mxu1 %v1590_v5  ;;  %v1596_v12 = vld [vmem:[%s2130_s1 + $0x68] sm:$0xff]  ;;  %v1595_v16 = vld [vmem:[%s2130_s1 + $0x60] sm:$0xff]  ;;  %v427_v19 = vld [vmem:[%s2134_s5 + $0x10] sm:$0xff]  ;;  %vm476_vm0 = vcmp.lt.s32.totalorder %v1850_v41, 7  ;;  %vm443_vm1 = vcmp.lt.s32.totalorder %v1850_v41, 1 }
  0x10   : > { %743 = vmatpush.bf16.msra.mxu2 %v1606_v6  ;;  %v1588_v14 = vld [vmem:[%s2130_s1 + $0x28] sm:$0xff]  ;;  %v1587_v17 = vld [vmem:[%s2130_s1 + $0x20] sm:$0xff]  ;;  %v428_v20 = vld [vmem:[%s2134_s5 + $0x18] sm:$0xff] }
  0x11   : > { %v1604_v15 = vld [vmem:[%s2130_s1 + $0xa8] sm:$0xff]  ;;  %v1603_v18 = vld [vmem:[%s2130_s1 + $0xa0] sm:$0xff]  ;;  %v1594_v21 = vld [vmem:[%s2130_s1 + $0x58] sm:$0xff] }
  0x12   : > { %591 = vmatpush.bf16.msra.mxu0 %v1597_v7  ;;  %v1586_v22 = vld [vmem:[%s2130_s1 + $0x18] sm:$0xff]  ;;  %v1593_v24 = vld [vmem:[%s2130_s1 + $0x50] sm:$0xff]  ;;  %v1592_v25 = vld [vmem:[%s2130_s1 + $0x48] sm:$0xff] }
  0x13   : > { %658 = vmatpush.bf16.msra.mxu1 %v1589_v8  ;;  %v1602_v23 = vld [vmem:[%s2130_s1 + $0x98] sm:$0xff]  ;;  %v1585_v26 = vld [vmem:[%s2130_s1 + $0x10] sm:$0xff]  ;;  %v1591_v28 = vld [vmem:[%s2130_s1 + $0x40] sm:$0xff] }
  0x14   : > { %744 = vmatpush.bf16.msra.mxu2 %v1605_v9  ;;  %v1601_v27 = vld [vmem:[%s2130_s1 + $0x90] sm:$0xff]  ;;  %v1584_v29 = vld [vmem:[%s2130_s1 + $0x8] sm:$0xff]  ;;  %v433_v31 = vld [vmem:[%s415_s18] sm:$0xff] }
  0x15   : > { %488 = vperm.xlu0 %1641, %v430_v10   ;;  %455 = vperm.xlu1 %1642, %v426_v11   ;;  %v1600_v30 = vld [vmem:[%s2130_s1 + $0x88] sm:$0xff]  ;;  %v1583_v34 = vld [vmem:[%s2130_s1] sm:$0xff]  ;;  %v436_v36 = vld [vmem:[%s415_s18 + $0x18] sm:$0xff]  ;;  %v472_v44 = vrot.slane %v433_v31, 1  ;;  %v437_v46 = vrot.slane %v433_v31, 7 }
  0x16   : > { %592 = vmatpush.bf16.msra.mxu0 %v1596_v12  ;;  %v434_v32 = vld [vmem:[%s415_s18 + $0x8] sm:$0xff]  ;;  %v1599_v35 = vld [vmem:[%s2130_s1 + $0x80] sm:$0xff]  ;;  %v435_v37 = vld [vmem:[%s415_s18 + $0x10] sm:$0xff]  ;;  %v440_v47 = vrot.slane %v436_v36, 7  ;;  %v475_v63 = vrot.slane %v436_v36, 1 }
  0x17   : > { %498 = vperm.xlu2 %1643, %v432_v13   ;;  %659 = vmatpush.bf16.msra.mxu1 %v1588_v14  ;;  %v523_v33 = vpack.c.bf16 %v434_v32, %v433_v31  ;;  %v524_v38 = vpack.c.bf16 %v436_v36, %v435_v37  ;;  %v1622_v40 = vld [vmem:[%s2132_s3 + $0x78] sm:$0xff]  ;;  %v473_v45 = vrot.slane %v434_v32, 1  ;;  %v474_v48 = vrot.slane %v435_v37, 1  ;;  %v1621_v14 = vld [vmem:[%s2132_s3 + $0x70] sm:$0xff]  ;;  %v1607_v39 = vld [vmem:[%s2132_s3] sm:$0xff] }
  0x18   : > { %745 = vmatpush.bf16.msra.mxu2 %v1604_v15  ;;  %887 = vmatpush.bf16.msra.mxu3 %v1622_v40  ;;  %v438_v49 = vrot.slane %v434_v32, 7  ;;  %v447_v51 = vsel %vm443_vm1, %v440_v47, %v437_v46  ;;  %v439_v0 = vrot.slane %v435_v37, 7  ;;  %v480_v3 = vsel %vm476_vm0, %v475_v63, %v472_v44  ;;  %v1620_v15 = vld [vmem:[%s2132_s3 + $0x68] sm:$0xff]  ;;  %v1610_v31 = vld [vmem:[%s2132_s3 + $0x18] sm:$0xff]  ;;  %v1166_v41 = vld [vmem:[%s2138_s9 + $0x70] sm:$0xff] }
  0x19   : > { %v479_v50 = vsel %vm476_vm0, %v472_v44, %v473_v45  ;;  %v478_v52 = vsel %vm476_vm0, %v473_v45, %v474_v48  ;;  %v477_v2 = vsel %vm476_vm0, %v474_v48, %v475_v63  ;;  %v1624_v32 = vld [vmem:[%s2132_s3 + $0x88] sm:$0xff] }
  0x1a   : > { %593 = vmatpush.bf16.msra.mxu0 %v1595_v16  ;;  %v446_v53 = vsel %vm443_vm1, %v437_v46, %v438_v49  ;;  %v445_v5 = vsel %vm443_vm1, %v438_v49, %v439_v0  ;;  %v444_v7 = vsel %vm443_vm1, %v439_v0, %v440_v47  ;;  %v1619_v16 = vld [vmem:[%s2132_s3 + $0x60] sm:$0xff]  ;;  %v1608_v37 = vld [vmem:[%s2132_s3 + $0x8] sm:$0xff] }
  0x1b   : > { %660 = vmatpush.bf16.msra.mxu1 %v1587_v17  ;;  %v1630_v17 = vld [vmem:[%s2132_s3 + $0xb8] sm:$0xff]  ;;  %v1654_v47 = vld [vmem:[%s2131_s2] ss:$0 sm:$0xff] }
  0x1c   : > { %746 = vmatpush.bf16.msra.mxu2 %v1603_v18  ;;  %888 = vmatpush.bf16.msra.mxu3 %v1621_v14  ;;  %v1618_v18 = vld [vmem:[%s2132_s3 + $0x58] sm:$0xff] }
  0x1d   : > { %460 = vperm.xlu0 %1641, %v427_v19   ;;  %465 = vperm.xlu1 %1642, %v428_v20   ;;  %v1629_v19 = vld [vmem:[%s2132_s3 + $0xb0] sm:$0xff] }
  0x1e   : > { %594 = vmatpush.bf16.msra.mxu0 %v1594_v21  ;;  %v1617_v20 = vld [vmem:[%s2132_s3 + $0x50] sm:$0xff]  ;;  %v1614_v21 = vld [vmem:[%s2132_s3 + $0x38] sm:$0xff] }
  0x1f   : > { %661 = vmatpush.bf16.msra.mxu1 %v1586_v22  ;;  %v1628_v22 = vld [vmem:[%s2132_s3 + $0xa8] sm:$0xff] }
  0x20   : > { %747 = vmatpush.bf16.msra.mxu2 %v1602_v23  ;;  %889 = vmatpush.bf16.msra.mxu3 %v1620_v15  ;;  %v1616_v23 = vld [vmem:[%s2132_s3 + $0x48] sm:$0xff] }
  0x22   : > { %595 = vmatpush.bf16.msra.mxu0 %v1593_v24  ;;  %v1613_v24 = vld [vmem:[%s2132_s3 + $0x30] sm:$0xff] }
  0x23   : > { %662 = vmatpush.bf16.msra.mxu1 %v1585_v26  ;;  %v1615_v26 = vld [vmem:[%s2132_s3 + $0x40] sm:$0xff] }
  0x24   : > { %748 = vmatpush.bf16.msra.mxu2 %v1601_v27  ;;  %890 = vmatpush.bf16.msra.mxu3 %v1619_v16  ;;  %v1612_v27 = vld [vmem:[%s2132_s3 + $0x28] sm:$0xff] }
  0x26   : > { %596 = vmatpush.bf16.msra.mxu0 %v1592_v25  ;;  %v1627_v25 = vld [vmem:[%s2132_s3 + $0xa0] sm:$0xff] }
  0x27   : > { %663 = vmatpush.bf16.msra.mxu1 %v1584_v29  ;;  %v1611_v29 = vld [vmem:[%s2132_s3 + $0x20] sm:$0xff] }
  0x28   : > { %749 = vmatpush.bf16.msra.mxu2 %v1600_v30  ;;  %891 = vmatpush.bf16.msra.mxu3 %v1618_v18  ;;  %v1625_v30 = vld [vmem:[%s2132_s3 + $0x90] sm:$0xff] }
  0x2a   : > { %597 = vmatpush.bf16.msra.mxu0 %v1591_v28  ;;  %v1626_v28 = vld [vmem:[%s2132_s3 + $0x98] sm:$0xff] }
  0x2b   : > { %664 = vmatpush.bf16.msra.mxu1 %v1583_v34  ;;  %v1609_v34 = vld [vmem:[%s2132_s3 + $0x10] sm:$0xff] }
  0x2c   : > { %750 = vmatpush.bf16.msra.mxu2 %v1599_v35  ;;  %892 = vmatpush.bf16.msra.mxu3 %v1617_v20  ;;  %v1623_v35 = vld [vmem:[%s2132_s3 + $0x80] sm:$0xff] }
  0x2d   : > { %598 = vmatmul.bf16.vlgmr.msra.gmra.mxu0 %v523_v33 }
  0x2e   : > { %954 = vmatpush.bf16.msrb.mxu0 %v1614_v21 }
  0x2f   : > { %1040 = vmatpush.bf16.msrb.mxu1 %v1630_v17 }
  0x30   : > { %893 = vmatpush.bf16.msra.mxu3 %v1616_v23 }
  0x32   : > { %955 = vmatpush.bf16.msrb.mxu0 %v1613_v24 }
  0x33   : > { %1041 = vmatpush.bf16.msrb.mxu1 %v1629_v19 }
  0x34   : > { %894 = vmatpush.bf16.msra.mxu3 %v1615_v26 }
  0x36   : > { %956 = vmatpush.bf16.msrb.mxu0 %v1612_v27 }
  0x37   : > { %1042 = vmatpush.bf16.msrb.mxu1 %v1628_v22 }
  0x3a   : > { %957 = vmatpush.bf16.msrb.mxu0 %v1611_v29 }
  0x3b   : > { %1043 = vmatpush.bf16.msrb.mxu1 %v1627_v25 }
  0x3d   : > { %603 = vmatmul.bf16.gmra.mxu0 %v524_v38 }
  0x3e   : > { %958 = vmatpush.bf16.msrb.mxu0 %v1610_v31 }
  0x3f   : > { %1044 = vmatpush.bf16.msrb.mxu1 %v1626_v28 }
  0x42   : > { %959 = vmatpush.bf16.msrb.mxu0 %v1609_v34 }
  0x43   : > { %1045 = vmatpush.bf16.msrb.mxu1 %v1625_v30 }
  0x46   : > { %960 = vmatpush.bf16.msrb.mxu0 %v1608_v37 }
  0x47   : > { %1046 = vmatpush.bf16.msrb.mxu1 %v1624_v32 }
  0x4a   : > { %961 = vmatpush.bf16.msrb.mxu0 %v1607_v39  ;;  %v1655_v39 = vld [vmem:[%s2133_s4] ss:$0 sm:$0xff] }
  0x4b   : > { %1047 = vmatpush.bf16.msrb.mxu1 %v1623_v35 }
  0x69   : > { %v1872_v58 = vpop.permute.xlu2 %493 }
  0x6a   : > { %v503_v8 = vmul.f32 %v1872_v58, %v477_v2 }
  0x71   : > { %v1876_v1 = vpop.permute.xlu2 %498 }
  0x72   : > { %v504_v9 = vmul.f32 %v1876_v1, %v480_v3 }
  0x74   : > { %v677_v13 = vpack.c.bf16 %v504_v9, %v503_v8 }
  0x7f   : > { %v1852_v42 = vpop.permute.xlu0 %483  ;;  %v1854_v43 = vpop.permute.xlu1 %450 }
  0x80   : > { %v501_v56 = vmul.f32 %v1852_v42, %v479_v50  ;;  %v468_v57 = vmul.f32 %v1854_v43, %v447_v51 }
  0x87   : > { %v1866_v54 = vpop.permute.xlu0 %488  ;;  %v1868_v55 = vpop.permute.xlu1 %455 }
  0x88   : > { %v502_v59 = vmul.f32 %v1866_v54, %v478_v52  ;;  %v469_v60 = vmul.f32 %v1868_v55, %v446_v53 }
  0x8a   : > { %v505_v61 = vpack.c.bf16 %v469_v60, %v468_v57  ;;  %v676_v62 = vpack.c.bf16 %v502_v59, %v501_v56 }
  0x8c   : > { %665 = vmatmul.bf16.vlgmr.msra.gmra.mxu1 %v505_v61  ;;  %751 = vmatmul.bf16.vlgmr.msra.gmra.mxu2 %v676_v62 }
  0x8f   : > { %v1882_v4 = vpop.permute.xlu0 %460  ;;  %v1886_v6 = vpop.permute.xlu1 %465 }
  0x90   : > { %v470_v10 = vmul.f32 %v1882_v4, %v445_v5  ;;  %v471_v11 = vmul.f32 %v1886_v6, %v444_v7 }
  0x92   : > { %v506_v12 = vpack.c.bf16 %v471_v11, %v470_v10 }
  0x9c   : > { %670 = vmatmul.bf16.gmra.mxu1 %v506_v12  ;;  %756 = vmatmul.bf16.gmra.mxu2 %v677_v13 }
  0xaa   : > { %v599_v33 = vpop.f32.mrf.mxu0 }
  0xb2   : > { %v601_v40 = vpop.f32.mrf.mxu0 }
  0xba   : > { %v604_v56 = vpop.f32.mrf.mxu0 }
  0xc2   : > { %v606_v8 = vpop.f32.mrf.mxu0 }
 0x109   : > { %v666_v36 = vpop.f32.mrf.mxu1 }
 0x10a   : > { %v667_v45 = vadd.f32 %v666_v36, %v599_v33 }
 0x10f   : > { %v752_v38 = vpop.f32.mrf.mxu2 }
 0x110   : > { %v762_v46 = vadd.f32 %v752_v38, %v667_v45 }
 0x111   : > { %v668_v44 = vpop.f32.mrf.mxu1 }
 0x112   : > { %v669_v48 = vadd.f32 %v668_v44, %v601_v40  ;;  %v770_v50 = vadd.f32 %v1654_v47, %v762_v46 }
 0x114   : > { %v774_v57 = vmax.f32 %v770_v50, 0.0 }
 0x116   : > { %v790_v5 = vrot.slane %v774_v57, 1  ;;  %v778_v20 = vrot.slane %v774_v57, 7 }
 0x117   : > { %v754_v49 = vpop.f32.mrf.mxu2 }
 0x118   : > { %v763_v51 = vadd.f32 %v754_v49, %v669_v48 }
 0x119   : > { %v671_v52 = vpop.f32.mrf.mxu1 }
 0x11a   : > { %v771_v53 = vadd.f32 %v1654_v47, %v763_v51  ;;  %v672_v60 = vadd.f32 %v671_v52, %v604_v56 }
 0x11c   : > { %v775_v59 = vmax.f32 %v771_v53, 0.0 }
 0x11e   : > { %v820_v61 = vpack.c.bf16 %v775_v59, %v774_v57  ;;  %v791_v0 = vrot.slane %v775_v59, 1  ;;  %v779_v17 = vrot.slane %v775_v59, 7 }
 0x11f   : > { %v757_v62 = vpop.f32.mrf.mxu2 }
 0x120   : > { %v764_v63 = vadd.f32 %v757_v62, %v672_v60  ;;  %895 = vmatmul.bf16.vlgmr.msra.gmra.mxu3 %v820_v61  ;;  %v796_v11 = vsel %vm476_vm0, %v790_v5, %v791_v0  ;;  %v784_v24 = vsel %vm443_vm1, %v778_v20, %v779_v17 }
 0x121   : > { %v673_v3 = vpop.f32.mrf.mxu1  ;;  %v798_v15 = vmul.f32 %v796_v11, %v1852_v42 }
 0x122   : > { %v772_v2 = vadd.f32 %v1654_v47, %v764_v63  ;;  %v674_v10 = vadd.f32 %v673_v3, %v606_v8 }
 0x124   : > { %v776_v7 = vmax.f32 %v772_v2, 0.0 }
 0x126   : > { %v792_v9 = vrot.slane %v776_v7, 1  ;;  %v780_v32 = vrot.slane %v776_v7, 7 }
 0x127   : > { %v759_v12 = vpop.f32.mrf.mxu2 }
 0x128   : > { %v765_v13 = vadd.f32 %v759_v12, %v674_v10  ;;  %v795_v14 = vsel %vm476_vm0, %v791_v0, %v792_v9 }
 0x129   : > { %v799_v16 = vmul.f32 %v795_v14, %v1866_v54  ;;  %v787_v54 = vmul.f32 %v784_v24, %v1868_v55  ;;  %v783_v55 = vsel %vm443_vm1, %v779_v17, %v780_v32  ;;  %v1181_v24 = vld [vmem:[%s2139_s10 + $0x68] sm:$0xff] }
 0x12a   : > { %v773_v18 = vadd.f32 %v1654_v47, %v765_v13  ;;  %v788_v35 = vmul.f32 %v783_v55, %v1882_v4  ;;  %v1161_v55 = vld [vmem:[%s2138_s9 + $0x48] sm:$0xff] }
 0x12b   : > { %v973_v19 = vpack.c.bf16 %v799_v16, %v798_v15 }
 0x12c   : > { %v777_v21 = vmax.f32 %v773_v18, 0.0 }
 0x12d   : > { %1048 = vmatmul.bf16.vlgmr.msrb.gmra.mxu1 %v973_v19 }
 0x12e   : > { %v781_v22 = vrot.slane %v777_v21, 7  ;;  %v821_v23 = vpack.c.bf16 %v777_v21, %v776_v7  ;;  %v793_v25 = vrot.slane %v777_v21, 1  ;;  %v1183_v21 = vld [vmem:[%s2139_s10 + $0x78] sm:$0xff] }
 0x12f   : > { %1184 = vmatpush.msra.mxu0 %v1183_v21 }
 0x130   : > { %900 = vmatmul.bf16.gmra.mxu3 %v821_v23  ;;  %v785_v26 = vsel %vm443_vm1, %v781_v22, %v778_v20  ;;  %v794_v28 = vsel %vm476_vm0, %v792_v9, %v793_v25  ;;  %v797_v29 = vsel %vm476_vm0, %v793_v25, %v790_v5  ;;  %v1182_v23 = vld [vmem:[%s2139_s10 + $0x70] sm:$0xff]  ;;  %v1165_v25 = vld [vmem:[%s2138_s9 + $0x68] sm:$0xff] }
 0x131   : > { %v786_v42 = vmul.f32 %v785_v26, %v1854_v43  ;;  %v800_v30 = vmul.f32 %v794_v28, %v1872_v58  ;;  %v801_v31 = vmul.f32 %v797_v29, %v1876_v1  ;;  %v782_v43 = vsel %vm443_vm1, %v780_v32, %v781_v22  ;;  %v1167_v22 = vld [vmem:[%s2138_s9 + $0x78] sm:$0xff]  ;;  %1185 = vmatpush.msra.mxu0 %v1182_v23  ;;  %v1180_v26 = vld [vmem:[%s2139_s10 + $0x60] sm:$0xff]  ;;  %v1178_v29 = vld [vmem:[%s2139_s10 + $0x50] sm:$0xff] }
 0x132   : > { %v789_v34 = vmul.f32 %v782_v43, %v1886_v6  ;;  %1204 = vmatpush.msra.mxu1 %v1167_v22  ;;  %v1177_v43 = vld [vmem:[%s2139_s10 + $0x48] sm:$0xff] }
 0x133   : > { %v802_v27 = vpack.c.bf16 %v787_v54, %v786_v42  ;;  %v974_v33 = vpack.c.bf16 %v801_v31, %v800_v30  ;;  %v1164_v42 = vld [vmem:[%s2138_s9 + $0x60] sm:$0xff]  ;;  %1186 = vmatpush.msra.mxu0 %v1181_v24  ;;  %v1179_v54 = vld [vmem:[%s2139_s10 + $0x58] sm:$0xff]  ;;  %v1162_v30 = vld [vmem:[%s2138_s9 + $0x50] sm:$0xff] }
 0x134   : > { %v803_v36 = vpack.c.bf16 %v789_v34, %v788_v35  ;;  %1205 = vmatpush.msra.mxu1 %v1166_v41  ;;  %v1176_v35 = vld [vmem:[%s2139_s10 + $0x40] sm:$0xff] }
 0x135   : > { %962 = vmatmul.bf16.vlgmr.msrb.gmra.mxu0 %v802_v27  ;;  %v1163_v27 = vld [vmem:[%s2138_s9 + $0x58] sm:$0xff] }
 0x136   : > { %1206 = vmatpush.msra.mxu1 %v1165_v25  ;;  %1187 = vmatpush.msra.mxu0 %v1180_v26 }
 0x138   : > { %1207 = vmatpush.msra.mxu1 %v1164_v42  ;;  %1188 = vmatpush.msra.mxu0 %v1179_v54 }
 0x13a   : > { %1208 = vmatpush.msra.mxu1 %v1163_v27  ;;  %1189 = vmatpush.msra.mxu0 %v1178_v29 }
 0x13c   : > { %1209 = vmatpush.msra.mxu1 %v1162_v30  ;;  %1190 = vmatpush.msra.mxu0 %v1177_v43 }
 0x13d   : > { %1053 = vmatmul.bf16.gmra.mxu1 %v974_v33 }
 0x13e   : > { %1210 = vmatpush.msra.mxu1 %v1161_v55  ;;  %1191 = vmatpush.msra.mxu0 %v1176_v35 }
 0x145   : > { %967 = vmatmul.bf16.gmra.mxu0 %v803_v36  ;;  %v1160_v36 = vld [vmem:[%s2138_s9 + $0x40] sm:$0xff] }
 0x146   : > { %1211 = vmatpush.msra.mxu1 %v1160_v36 }
 0x1a3   : > { %v896_v37 = vpop.f32.mrf.mxu3 }
 0x1aa   : > { %v1049_v58 = vpop.f32.mrf.mxu1 }
 0x1ab   : > { %v898_v44 = vpop.f32.mrf.mxu3 }
 0x1b2   : > { %v963_v38 = vpop.f32.mrf.mxu0  ;;  %v1051_v4 = vpop.f32.mrf.mxu1 }
 0x1b3   : > { %v964_v1 = vadd.f32 %v963_v38, %v896_v37  ;;  %v901_v50 = vpop.f32.mrf.mxu3  ;;  %v1175_v37 = vld [vmem:[%s2139_s10 + $0x38] sm:$0xff]  ;;  %v1174_v38 = vld [vmem:[%s2139_s10 + $0x30] sm:$0xff] }
 0x1b4   : > { %1192 = vmatpush.msra.mxu0 %v1175_v37 }
 0x1b5   : > { %v1059_v40 = vadd.f32 %v1049_v58, %v964_v1  ;;  %v1159_v58 = vld [vmem:[%s2138_s9 + $0x38] sm:$0xff]  ;;  %v1158_v1 = vld [vmem:[%s2138_s9 + $0x30] sm:$0xff] }
 0x1b6   : > { %1212 = vmatpush.msra.mxu1 %v1159_v58  ;;  %1193 = vmatpush.msra.mxu0 %v1174_v38 }
 0x1b7   : > { %v1067_v45 = vadd.f32 %v1655_v39, %v1059_v40  ;;  %v1157_v40 = vld [vmem:[%s2138_s9 + $0x28] sm:$0xff] }
 0x1b8   : > { %1213 = vmatpush.msra.mxu1 %v1158_v1 }
 0x1b9   : > { %v1071_v6 = vmax.f32 %v1067_v45, 0.0  ;;  %v1156_v45 = vld [vmem:[%s2138_s9 + $0x20] sm:$0xff] }
 0x1ba   : > { %v965_v46 = vpop.f32.mrf.mxu0  ;;  %v1054_v52 = vpop.f32.mrf.mxu1  ;;  %1214 = vmatpush.msra.mxu1 %v1157_v40 }
 0x1bb   : > { %1075 = vst [vmem:[%s1998_s19] sm:$0xff] %v1071_v6  ;;  %v966_v47 = vadd.f32 %v965_v46, %v898_v44  ;;  %v1079_v61 = vrot.slane %v1071_v6, 1  ;;  %v903_v63 = vpop.f32.mrf.mxu3  ;;  %v1172_v44 = vld [vmem:[%s2139_s10 + $0x20] sm:$0xff] }
 0x1bc   : > { %1215 = vmatpush.msra.mxu1 %v1156_v45 }
 0x1bd   : > { %v1060_v48 = vadd.f32 %v1051_v4, %v966_v47  ;;  %v1171_v4 = vld [vmem:[%s2139_s10 + $0x18] sm:$0xff] }
 0x1bf   : > { %v1068_v49 = vadd.f32 %v1655_v39, %v1060_v48 }
 0x1c1   : > { %v1072_v51 = vmax.f32 %v1068_v49, 0.0  ;;  %v1170_v49 = vld [vmem:[%s2139_s10 + $0x10] sm:$0xff] }
 0x1c2   : > { %v968_v53 = vpop.f32.mrf.mxu0  ;;  %v1056_v7 = vpop.f32.mrf.mxu1 }
 0x1c3   : > { %1076 = vst [vmem:[%s1998_s19 + $0x8] sm:$0xff] %v1072_v51  ;;  %v969_v56 = vadd.f32 %v968_v53, %v901_v50  ;;  %v1080_v59 = vrot.slane %v1072_v51, 1  ;;  %v1154_v50 = vld [vmem:[%s2138_s9 + $0x10] sm:$0xff]  ;;  %v1153_v53 = vld [vmem:[%s2138_s9 + $0x8] sm:$0xff] }
 0x1c5   : > { %v1061_v57 = vadd.f32 %v1054_v52, %v969_v56  ;;  %v1085_v5 = vsel %vm476_vm0, %v1079_v61, %v1080_v59  ;;  %v1169_v52 = vld [vmem:[%s2139_s10 + $0x8] sm:$0xff] }
 0x1c6   : > { %v2007_v10 = vmax.f32 %v1071_v6, %v1085_v5  ;;  %v1155_v6 = vld [vmem:[%s2138_s9 + $0x18] sm:$0xff] }
 0x1c7   : > { %v1069_v60 = vadd.f32 %v1655_v39, %v1061_v57  ;;  %1216 = vmatpush.msra.mxu1 %v1155_v6  ;;  %v1103_v57 = vld [vmem:[%s2136_s7] sm:$0xff] }
 0x1c9   : > { %v1073_v62 = vmax.f32 %v1069_v60, 0.0  ;;  %1217 = vmatpush.msra.mxu1 %v1154_v50  ;;  %v1168_v60 = vld [vmem:[%s2139_s10] sm:$0xff] }
 0x1ca   : > { %v970_v0 = vpop.f32.mrf.mxu0 }
 0x1cb   : > { %1077 = vst [vmem:[%s1998_s19 + $0x10] sm:$0xff] %v1073_v62  ;;  %v1081_v2 = vrot.slane %v1073_v62, 1  ;;  %v971_v3 = vadd.f32 %v970_v0, %v903_v63  ;;  %1218 = vmatpush.msra.mxu1 %v1153_v53 }
 0x1cd   : > { %v1062_v8 = vadd.f32 %v1056_v7, %v971_v3  ;;  %v1084_v9 = vsel %vm476_vm0, %v1080_v59, %v1081_v2  ;;  %v1128_v59 = vld [vmem:[%s2137_s8] sm:$0xff] }
 0x1ce   : > { %v2009_v11 = vmax.f32 %v1072_v51, %v1084_v9 }
 0x1cf   : > { %v1070_v12 = vadd.f32 %v1655_v39, %v1062_v8  ;;  %v1173_v39 = vld [vmem:[%s2139_s10 + $0x28] sm:$0xff] }
 0x1d0   : > { %v1649_v13 = vpack.i.bf16 %v2007_v10, %v2009_v11  ;;  %1194 = vmatpush.msra.mxu0 %v1173_v39 }
 0x1d1   : > { %v1074_v14 = vmax.f32 %v1070_v12, 0.0 }
 0x1d2   : > { %1650 = vrot.lane.b32.xlu0 %v1649_v13, %s1665_s23  ;;  %1195 = vmatpush.msra.mxu0 %v1172_v44 }
 0x1d3   : > { %1078 = vst [vmem:[%s1998_s19 + $0x18] sm:$0xff] %v1074_v14  ;;  %v1082_v15 = vrot.slane %v1074_v14, 1 }
 0x1d4   : > { %1196 = vmatpush.msra.mxu0 %v1171_v4 }
 0x1d5   : > { %v1083_v16 = vsel %vm476_vm0, %v1081_v2, %v1082_v15  ;;  %v1086_v17 = vsel %vm476_vm0, %v1082_v15, %v1079_v61  ;;  %v1152_v61 = vld [vmem:[%s2138_s9] sm:$0xff] }
 0x1d6   : > { %v1089_v18 = vmax.f32 %v1073_v62, %v1083_v16  ;;  %v1090_v19 = vmax.f32 %v1074_v14, %v1086_v17  ;;  %1197 = vmatpush.msra.mxu0 %v1170_v49  ;;  %1219 = vmatpush.msra.mxu1 %v1152_v61 }
 0x1d8   : > { %v1644_v20 = vpack.i.bf16 %v1089_v18, %v1090_v19  ;;  %1198 = vmatpush.msra.mxu0 %v1169_v52 }
 0x1da   : > { %1645 = vrot.lane.b32.xlu2 %v1644_v20, %s1665_s23  ;;  %1199 = vmatpush.msra.mxu0 %v1168_v60 }
 0x234   : > { %v1646_v28 = vpop.permute.xlu2 %1645 }
 0x235   : > { %v1648_v31 = vunpack.i.h.bf16 %v1646_v28  ;;  %v1647_v32 = vunpack.i.l.bf16 %v1646_v28 }
 0x237   : > { %v1102_v33 = vmax.f32 %v1090_v19, %v1647_v32  ;;  %v1101_v34 = vmax.f32 %v1089_v18, %v1648_v31 }
 0x239   : > { %1120 = vmatpush.msrb.mxu2 %v1102_v33  ;;  %1144 = vmatpush.msrb.mxu3 %v1102_v33 }
 0x23b   : > { %1121 = vmatpush.msrb.mxu2 %v1101_v34  ;;  %1145 = vmatpush.msrb.mxu3 %v1101_v34 }
 0x244   : > { %v1651_v46 = vpop.permute.xlu0 %1650 }
 0x245   : > { %v1653_v47 = vunpack.i.h.bf16 %v1651_v46  ;;  %v1652_v48 = vunpack.i.l.bf16 %v1651_v46 }
 0x247   : > { %v1100_v51 = vmax.f32 %v2009_v11, %v1652_v48  ;;  %v1099_v56 = vmax.f32 %v2007_v10, %v1653_v47 }
 0x249   : > { %1122 = vmatpush.msrb.mxu2 %v1100_v51  ;;  %1146 = vmatpush.msrb.mxu3 %v1100_v51 }
 0x24b   : > { %1123 = vmatpush.msrb.mxu2 %v1099_v56  ;;  %1147 = vmatpush.msrb.mxu3 %v1099_v56 }
 0x24c   : > { %1577 = vmatmul.msk.f32.vlgmr.msrb.gmra.mxu2 %vm1104_vm2, %v1103_v57  ;;  %1578 = vmatmul.msk.f32.vlgmr.msrb.gmra.mxu3 %vm1104_vm2, %v1128_v59 }
 0x2cf   : > { %v1125_v62 = vpop.f32.mrf.mxu2  ;;  %v1149_v63 = vpop.f32.mrf.mxu3 }
 0x2d0   : > { %1200 = vmatmul.f32.vlgmr.msra.gmra.mxu0 %v1149_v63  ;;  %1220 = vmatmul.f32.vlgmr.msra.gmra.mxu1 %v1125_v62 }
 0x34d   : > { %v1201_v0 = vpop.f32.mrf.mxu0  ;;  %v1221_v2 = vpop.f32.mrf.mxu1 }
 0x34e   : > { %v1222_v3 = vadd.f32 %v1221_v2, %v1201_v0 }
 0x350   : > { %1224 = vst [vmem:[%s424_s30] sm:$0xff] %v1222_v3 }
 0x351 PF: > { %s23_s21 = sadd.s32 1, %s1662_s21  }
 0x352   : > { %p20_p4 = scmp.ge.s32.totalorder %s23_s21, 4  }
 0x354   :  { %22 = sbr.rel (!%p20_p4) target bundleno = 1 (0x1), region = 110 }

</bundles_post_ra>
